<compile_context>
chip_gen: v7x
topology: tpu7x:2x2x1
jax: 0.10.0
libtpu: 0.0.40
codegen_flags: <defaults>
</compile_context>

<pallas_src>
import jax
import jax.numpy as jnp
from jax.experimental import pallas as pl
from jax.experimental.pallas import tpu as pltpu


# Lane-dense tiling constants (multiples of (8, 128)), sized by the f32
# output footprint so double-buffered blocks fit comfortably in VMEM on all
# TPU generations (including v7x's 64 MiB).
_LANES = 2048     # output lane width: large multiple of 128 -> unmasked stores
_TM_MAX = 512     # rows per block


def _cast_kernel(x_ref, o_ref):
    # Elementwise dtype conversion of the resident tile (VPU, no value rescale).
    o_ref[...] = x_ref[...].astype(o_ref.dtype)


def convert_image_dtype(x: jax.Array, dtype) -> jax.Array:
    """Pallas equivalent of MyConvertImageDtype(dtype)(x): a raw dtype cast."""
    orig_shape = x.shape
    out_dtype = jnp.dtype(dtype)

    total = 1
    for d in orig_shape:
        total *= d
    if total == 0:
        return jnp.zeros(orig_shape, out_dtype)

    # Flatten to a lane-dense (rows, _LANES) slab; the op is elementwise so
    # any reshape is legal layout plumbing.  Pad the tail if needed.
    lanes = _LANES
    rows = pl.cdiv(total, lanes)
    rows_padded = ((rows + 7) // 8) * 8          # sublane-align rows
    tm = min(_TM_MAX, rows_padded)               # biggest row tile that fits
    padded_total = rows_padded * lanes

    flat = x.reshape(-1)
    if padded_total != total:
        flat = jnp.pad(flat, (0, padded_total - total))
    x2d = flat.reshape(rows_padded, lanes)

    grid = (pl.cdiv(rows_padded, tm),)           # partial edge block is fine:
                                                 # (tm, lanes) is (8,128)-aligned

    in_bytes = padded_total * x.dtype.itemsize
    out_bytes = padded_total * out_dtype.itemsize

    out2d = pl.pallas_call(
        _cast_kernel,
        out_shape=jax.ShapeDtypeStruct((rows_padded, lanes), out_dtype),
        grid_spec=pltpu.PrefetchScalarGridSpec(
            num_scalar_prefetch=0,
            grid=grid,
            in_specs=[pl.BlockSpec((tm, lanes), lambda i: (i, 0))],
            out_specs=pl.BlockSpec((tm, lanes), lambda i: (i, 0)),
        ),
        compiler_params=pltpu.CompilerParams(
            # Row tiles are independent -> let Mosaic shard them across both
            # TensorCores on v7x; harmless no-op on v5e/v6e.
            dimension_semantics=("parallel",),
            vmem_limit_bytes=32 << 20,
        ),
        cost_estimate=pl.CostEstimate(
            flops=0, transcendentals=0, bytes_accessed=in_bytes + out_bytes),
    )(x2d)

    # Strip padding and restore the original NCHW shape.
    return out2d.reshape(-1)[:total].reshape(orig_shape)


if __name__ == "__main__":
    key = jax.random.PRNGKey(0)
    # Small NCHW image batch: batch=2, channels=4, spatial=16x16, uint8 pixels.
    x = jax.random.randint(key, (2, 4, 16, 16), minval=0, maxval=256,
                           dtype=jnp.int32).astype(jnp.uint8)

    target_dtype = jnp.float32  # the `dtype` the module would be constructed with
    y = convert_image_dtype(x, target_dtype)
    y = jax.block_until_ready(y)

    # Reference: plain cast, no normalization (exactly x.to(dtype) semantics).
    ref = x.astype(target_dtype)
    assert y.dtype == target_dtype
    assert y.shape == x.shape
    assert bool(jnp.all(y == ref))

    print("KERNEL_OK")
</pallas_src>

<mosaic_0001>
module attributes {stable_mosaic.version = 11 : i64} {
  func.func @_cast_kernel(%arg0: i32, %arg1: memref<8x2048xi8, #tpu.memory_space<vmem>>, %arg2: memref<8x2048xf32, #tpu.memory_space<vmem>>) attributes {dimension_semantics = [#tpu.dimension_semantics<parallel>], iteration_bounds = array<i64: 1>, scalar_prefetch = 0 : i64, scratch_operands = 0 : i64, tpu.core_type = #tpu.core_type<tc>, window_params = [{transform_indices = @transform_0, window_bounds = array<i64: 8, 2048>}, {transform_indices = @transform_1, window_bounds = array<i64: 8, 2048>}]} {
    %c0 = arith.constant 0 : index
    %c0_0 = arith.constant 0 : index
    %0 = vector.load %arg1[%c0, %c0_0] : memref<8x2048xi8, #tpu.memory_space<vmem>>, vector<8x2048xi8>
    %1 = arith.uitofp %0 : vector<8x2048xi8> to vector<8x2048xf32>
    %c0_1 = arith.constant 0 : index
    %c0_2 = arith.constant 0 : index
    %2 = vector.load %arg2[%c0_1, %c0_2] : memref<8x2048xf32, #tpu.memory_space<vmem>>, vector<8x2048xf32>
    tpu.vector_store %arg2[%c0_1, %c0_2], %1 {strides = array<i32>} : memref<8x2048xf32, #tpu.memory_space<vmem>>, vector<8x2048xf32>,
    return
  }
  func.func @transform_0(%arg0: i32) -> (i32, i32) {
    %c0_i32 = arith.constant 0 : i32
    %c0_i32_0 = arith.constant 0 : i32
    return %arg0, %c0_i32 : i32, i32
  }
  func.func @transform_1(%arg0: i32) -> (i32, i32) {
    %c0_i32 = arith.constant 0 : i32
    %c0_i32_0 = arith.constant 0 : i32
    return %arg0, %c0_i32 : i32, i32
  }
}

</mosaic_0001>

<bundles_post_ra>
// kernel: tpu_custom_call.1
= control target key start
LH: loop header
LB: loop body
LE: loop exit
PB: predicated region body
PF: predicated region fallthrough
CT: control target
= control target key end

     0   :  { %6 = vsyncpa [#allocation3], 0  ;;  %s190_s0 = inlined_call_operand.hbm [shape: u8[8,2048], index: 0, kind: input, shape index: {}]   ;;  %s191_s1 = inlined_call_operand.hbm [shape: f32[8,2048], index: 1, kind: output, shape index: {}]  }
   0x1   :  { %7 = vsyncpa [#allocation4], 0  ;;  %s154_s6 = smov [#allocation2]   ;;  %s106_s10 = scalar_lea.hbm %s190_s0, 512 }
   0x2   :  { %s14_s7 = sshll.u32 %s154_s6, 4  ;;  %p107_p0 = scmp.ne.s32.totalorder %s190_s0, %s106_s10  ;;  %s15_s7 = int_to_ptr.vmem [resolvable:$true] %s14_s7 }
   0x3   :  { %p110_p1 = scmp.lt.u32.totalorder %s106_s10, %s190_s0 }
   0x5   :  { %p112_p2 = pnand %p110_p1, %p107_p0 }
   0x7   :  { %115 = shalt.err (!%p112_p2)
}
   0x8   :  { %s116_s15 = scalar_lea.vmem %s15_s7, 512  ;;  %p121_p4 = scmp.lt.s32.totalorder %s15_s7, %s15_s7 }
   0x9   :  { %p117_p3 = scmp.ne.s32.totalorder %s15_s7, %s116_s15  ;;  %p122_p5 = scmp.lt.s32.totalorder %s116_s15, %s116_s15 }
   0xb   :  { %p123_p6 = por %p122_p5, %p121_p4 }
   0xd   :  { %p124_p7 = pnand %p123_p6, %p117_p3 }
   0xf   :  { %127 = shalt.err (!%p124_p7)
}
  0x10   :  { %17 = dma.hbm_to_vmem [thread:$0]  %s190_s0, 512, %s15_s7, [#allocation3]  }
  0x11   :  { %150 = dma.done.wait [#allocation3], 512  }
  0x12   :  { %151 = vsyncadd [#allocation3], 4294966784  ;;  %v21_v0 = vld [vmem:[#allocation2] sm:$0xff]  ;;  %v22_v1 = vld [vmem:[#allocation2 + $0x8] sm:$0xff]  ;;  %s155_s0 = smov [#allocation5]  }
  0x13   :  { %v25_v2 = vunpack.c.0.s8 %v21_v0  ;;  %v26_v3 = vunpack.c.1.s8 %v21_v0  ;;  %v27_v4 = vunpack.c.2.s8 %v21_v0  ;;  %v28_v5 = vunpack.c.3.s8 %v21_v0  ;;  %v23_v18 = vld [vmem:[#allocation2 + $0x10] sm:$0xff]  ;;  %v24_v23 = vld [vmem:[#allocation2 + $0x18] sm:$0xff]  ;;  %s95_s18 = sshll.u32 %s155_s0, 4  ;;  %s96_s18 = int_to_ptr.vmem [resolvable:$true] %s95_s18 }
  0x14   :  { %v29_v6 = vunpack.c.0.s8 %v22_v1  ;;  %v30_v7 = vunpack.c.1.s8 %v22_v1  ;;  %v31_v8 = vunpack.c.2.s8 %v22_v1  ;;  %v32_v9 = vunpack.c.3.s8 %v22_v1  ;;  %s128_s19 = scalar_lea.vmem %s96_s18, 2048  ;;  %p133_p9 = scmp.lt.s32.totalorder %s96_s18, %s96_s18 }
  0x15   :  { %v41_v10 = vand.u32 255, %v25_v2  ;;  %v42_v11 = vand.u32 255, %v26_v3  ;;  %v43_v12 = vand.u32 255, %v27_v4  ;;  %v44_v13 = vand.u32 255, %v28_v5  ;;  %p129_p8 = scmp.ne.s32.totalorder %s96_s18, %s128_s19  ;;  %p134_p10 = scmp.lt.s32.totalorder %s128_s19, %s128_s19 }
  0x16   :  { %v45_v14 = vand.u32 255, %v29_v6  ;;  %v46_v15 = vand.u32 255, %v30_v7  ;;  %v47_v16 = vand.u32 255, %v31_v8  ;;  %v48_v17 = vand.u32 255, %v32_v9 }
  0x17   :  { %v57_v19 = vcvt.s32.f32 %v41_v10  ;;  %v58_v20 = vcvt.s32.f32 %v42_v11  ;;  %v59_v21 = vcvt.s32.f32 %v43_v12  ;;  %v60_v22 = vcvt.s32.f32 %v44_v13  ;;  %p135_p11 = por %p134_p10, %p133_p9 }
  0x18   :  { %v61_v24 = vcvt.s32.f32 %v45_v14  ;;  %v62_v25 = vcvt.s32.f32 %v46_v15  ;;  %v63_v26 = vcvt.s32.f32 %v47_v16  ;;  %v64_v27 = vcvt.s32.f32 %v48_v17 }
  0x19   :  { %73 = vst [vmem:[#allocation5] sm:$0xff] %v57_v19  ;;  %74 = vst [vmem:[#allocation5 + $0x8] sm:$0xff] %v58_v20  ;;  %v33_v28 = vunpack.c.0.s8 %v23_v18  ;;  %v34_v29 = vunpack.c.1.s8 %v23_v18  ;;  %v35_v30 = vunpack.c.2.s8 %v23_v18  ;;  %v36_v31 = vunpack.c.3.s8 %v23_v18  ;;  %p136_p12 = pnand %p135_p11, %p129_p8 }
  0x1a   :  { %75 = vst [vmem:[#allocation5 + $0x10] sm:$0xff] %v59_v21  ;;  %76 = vst [vmem:[#allocation5 + $0x18] sm:$0xff] %v60_v22  ;;  %v37_v32 = vunpack.c.0.s8 %v24_v23  ;;  %v38_v33 = vunpack.c.1.s8 %v24_v23  ;;  %v39_v34 = vunpack.c.2.s8 %v24_v23  ;;  %v40_v35 = vunpack.c.3.s8 %v24_v23 }
  0x1b   :  { %77 = vst [vmem:[#allocation5 + $0x20] sm:$0xff] %v61_v24  ;;  %78 = vst [vmem:[#allocation5 + $0x28] sm:$0xff] %v62_v25  ;;  %v49_v36 = vand.u32 255, %v33_v28  ;;  %v50_v37 = vand.u32 255, %v34_v29  ;;  %v51_v38 = vand.u32 255, %v35_v30  ;;  %v52_v39 = vand.u32 255, %v36_v31 }
  0x1c   :  { %79 = vst [vmem:[#allocation5 + $0x30] sm:$0xff] %v63_v26  ;;  %80 = vst [vmem:[#allocation5 + $0x38] sm:$0xff] %v64_v27  ;;  %v53_v40 = vand.u32 255, %v37_v32  ;;  %v54_v41 = vand.u32 255, %v38_v33  ;;  %v55_v42 = vand.u32 255, %v39_v34  ;;  %v56_v43 = vand.u32 255, %v40_v35 }
  0x1d   :  { %v65_v44 = vcvt.s32.f32 %v49_v36  ;;  %v66_v45 = vcvt.s32.f32 %v50_v37  ;;  %v67_v46 = vcvt.s32.f32 %v51_v38  ;;  %v68_v47 = vcvt.s32.f32 %v52_v39 }
  0x1e   :  { %v69_v48 = vcvt.s32.f32 %v53_v40  ;;  %v70_v49 = vcvt.s32.f32 %v54_v41  ;;  %v71_v50 = vcvt.s32.f32 %v55_v42  ;;  %v72_v51 = vcvt.s32.f32 %v56_v43 }
  0x1f   :  { %81 = vst [vmem:[#allocation5 + $0x40] sm:$0xff] %v65_v44  ;;  %82 = vst [vmem:[#allocation5 + $0x48] sm:$0xff] %v66_v45 }
  0x20   :  { %83 = vst [vmem:[#allocation5 + $0x50] sm:$0xff] %v67_v46  ;;  %84 = vst [vmem:[#allocation5 + $0x58] sm:$0xff] %v68_v47 }
  0x21   :  { %85 = vst [vmem:[#allocation5 + $0x60] sm:$0xff] %v69_v48  ;;  %86 = vst [vmem:[#allocation5 + $0x68] sm:$0xff] %v70_v49 }
  0x22   :  { %87 = vst [vmem:[#allocation5 + $0x70] sm:$0xff] %v71_v50  ;;  %88 = vst [vmem:[#allocation5 + $0x78] sm:$0xff] %v72_v51 }
  0x23   :  { %139 = shalt.err (!%p136_p12)
}
  0x24   :  { %s140_s22 = scalar_lea.hbm %s191_s1, 2048 }
  0x25   :  { %p141_p13 = scmp.ne.s32.totalorder %s191_s1, %s140_s22  ;;  %p144_p0 = scmp.lt.u32.totalorder %s140_s22, %s191_s1 }
  0x27   :  { %p146_p1 = pnand %p144_p0, %p141_p13 }
  0x29   :  { %149 = shalt.err (!%p146_p1)
}
  0x2a   :  { %98 = dma.vmem_to_hbm [thread:$0]  %s96_s18, 2048, %s191_s1, [#allocation4]  }
  0x2b   :  { %152 = dma.done.wait [#allocation4], 2048  }
  0x2c   :  { %153 = vsyncadd [#allocation4], 4294965248 }
  0x2d   :  { %102 = vsyncpa [#allocation3], 1 }
  0x2e   :  { %103 = vsyncpa [#allocation4], 1 }

</bundles_post_ra>
